<compile_context>
chip_gen: v7x
topology: tpu7x:2x2x1
jax: 0.10.0
libtpu: 0.0.40
codegen_flags: <defaults>
</compile_context>

<pallas_src>
import functools

import jax
import jax.numpy as jnp
from jax.experimental import pallas as pl
from jax.experimental.pallas import tpu as pltpu

_LANE = 128


def _round_up(x, m):
    return (x + m - 1) // m * m


def _qnet_kernel(x_ref, w1_ref, b1_ref, w2_ref, b2_ref, w3_ref, b3_ref, out_ref):
    # One batch tile per grid step; all three layers fused in VMEM.
    x = x_ref[...]
    h1 = jnp.dot(x, w1_ref[...], preferred_element_type=jnp.float32) + b1_ref[...]
    h1 = jnp.maximum(h1, 0.0)                      # ReLU
    h2 = jnp.dot(h1, w2_ref[...], preferred_element_type=jnp.float32) + b2_ref[...]
    h2 = jnp.maximum(h2, 0.0)                      # ReLU
    q = jnp.dot(h2, w3_ref[...], preferred_element_type=jnp.float32) + b3_ref[...]
    out_ref[...] = q.astype(out_ref.dtype)         # lane-dense (TB, 128k) store


@functools.partial(jax.jit, static_argnames=("action_dim", "block_batch"))
def qnetwork_forward(x, w1, b1, w2, b2, w3, b3, *, action_dim, block_batch=512):
    """Fused QNetwork forward.  Weights must be the padded layout produced by
    init_qnetwork_params (in_features, out_features) with lane-padded dims."""
    batch, state_dim = x.shape
    h1p = w1.shape[1]          # padded fc1 width (multiple of 128)
    h2p = w2.shape[1]          # padded fc2 width (multiple of 128)
    out_pad = w3.shape[1]      # padded action width (multiple of 128)

    # Batch tile: multiple of 8 sublanes, capped at block_batch; pad batch so
    # the grid divides evenly (padded rows are sliced off at the end).
    tb = min(block_batch, _round_up(batch, 8))
    padded_batch = _round_up(batch, tb)
    if padded_batch != batch:
        x = jnp.pad(x, ((0, padded_batch - batch), (0, 0)))
    grid = (padded_batch // tb,)

    flops = 2 * padded_batch * (state_dim * h1p + h1p * h2p + h2p * out_pad)
    bytes_accessed = 4 * (
        padded_batch * state_dim                 # x
        + state_dim * h1p + h1p                  # w1, b1
        + h1p * h2p + h2p                        # w2, b2
        + h2p * out_pad + out_pad                # w3, b3
        + padded_batch * out_pad                 # out
    )

    out = pl.pallas_call(
        _qnet_kernel,
        out_shape=jax.ShapeDtypeStruct((padded_batch, out_pad), jnp.float32),
        grid=grid,
        in_specs=[
            pl.BlockSpec((tb, state_dim), lambda i: (i, 0)),   # x: batch-tiled
            pl.BlockSpec((state_dim, h1p), lambda i: (0, 0)),  # weights/biases
            pl.BlockSpec((1, h1p), lambda i: (0, 0)),          # stay resident
            pl.BlockSpec((h1p, h2p), lambda i: (0, 0)),
            pl.BlockSpec((1, h2p), lambda i: (0, 0)),
            pl.BlockSpec((h2p, out_pad), lambda i: (0, 0)),
            pl.BlockSpec((1, out_pad), lambda i: (0, 0)),
        ],
        out_specs=pl.BlockSpec((tb, out_pad), lambda i: (i, 0)),
        compiler_params=pltpu.CompilerParams(
            dimension_semantics=("parallel",),   # shard batch grid across TCs (v7x)
        ),
        cost_estimate=pl.CostEstimate(
            flops=flops, transcendentals=0, bytes_accessed=bytes_accessed
        ),
    )(x, w1, b1, w2, b2, w3, b3)

    # Slice away batch padding and the lane padding of the Q output.
    return out[:batch, :action_dim]


def init_qnetwork_params(key, state_dim, action_dim, fc1_dim=64, fc2_dim=64):
    """Deterministic init mirroring nn.Linear's U(-1/sqrt(fan_in), 1/sqrt(fan_in)).

    Weights are returned transposed to (in_features, out_features) and
    zero-padded so every hidden/output dim is a multiple of 128 (lane-dense
    MXU tiles, unmasked stores).  Zero padding is exactly neutral: padded
    hidden units are ReLU(0)=0 and padded output columns are 0.
    """
    keys = jax.random.split(key, 6)
    h1p = _round_up(fc1_dim, _LANE)
    h2p = _round_up(fc2_dim, _LANE)
    ap = _round_up(action_dim, _LANE)

    def linear(kw, kb, fan_in, fan_out, pad_in, pad_out):
        bound = 1.0 / jnp.sqrt(jnp.float32(fan_in))
        w = jax.random.uniform(kw, (fan_in, fan_out), jnp.float32, -bound, bound)
        b = jax.random.uniform(kb, (1, fan_out), jnp.float32, -bound, bound)
        w = jnp.pad(w, ((0, pad_in - fan_in), (0, pad_out - fan_out)))
        b = jnp.pad(b, ((0, 0), (0, pad_out - fan_out)))
        return w, b

    w1, b1 = linear(keys[0], keys[1], state_dim, fc1_dim, state_dim, h1p)
    w2, b2 = linear(keys[2], keys[3], fc1_dim, fc2_dim, h1p, h2p)
    w3, b3 = linear(keys[4], keys[5], fc2_dim, action_dim, h2p, ap)
    return w1, b1, w2, b2, w3, b3


if __name__ == "__main__":
    key = jax.random.PRNGKey(0)
    k_params, k_x = jax.random.split(key)

    batch = 8
    state_dim = 8      # small RL observation
    action_dim = 4     # small discrete action space
    fc1_dim = 64
    fc2_dim = 64

    params = init_qnetwork_params(k_params, state_dim, action_dim, fc1_dim, fc2_dim)
    x = jax.random.normal(k_x, (batch, state_dim), jnp.float32)

    q_values = qnetwork_forward(x, *params, action_dim=action_dim)
    jax.block_until_ready(q_values)

    # Pure-JAX reference check (padded params; padding is mathematically neutral).
    w1, b1, w2, b2, w3, b3 = params
    ref = jnp.maximum(x @ w1 + b1, 0.0)
    ref = jnp.maximum(ref @ w2 + b2, 0.0)
    ref = (ref @ w3 + b3)[:, :action_dim]
    assert q_values.shape == (batch, action_dim)
    assert jnp.allclose(q_values, ref, atol=1e-5, rtol=1e-5)

    # Also exercise the multi-step (pipelined) grid path with a larger batch.
    big_batch = 1024
    xb = jax.random.normal(jax.random.PRNGKey(1), (big_batch, state_dim), jnp.float32)
    qb = qnetwork_forward(xb, *params, action_dim=action_dim)
    jax.block_until_ready(qb)
    refb = jnp.maximum(xb @ w1 + b1, 0.0)
    refb = jnp.maximum(refb @ w2 + b2, 0.0)
    refb = (refb @ w3 + b3)[:, :action_dim]
    assert qb.shape == (big_batch, action_dim)
    assert jnp.allclose(qb, refb, atol=1e-5, rtol=1e-5)

    print("KERNEL_OK")
</pallas_src>

<mosaic_0001>
module attributes {stable_mosaic.version = 11 : i64} {
  func.func @_qnet_kernel(%arg0: i32, %arg1: memref<8x8xf32, #tpu.memory_space<vmem>>, %arg2: memref<8x128xf32, #tpu.memory_space<vmem>>, %arg3: memref<1x128xf32, #tpu.memory_space<vmem>>, %arg4: memref<128x128xf32, #tpu.memory_space<vmem>>, %arg5: memref<1x128xf32, #tpu.memory_space<vmem>>, %arg6: memref<128x128xf32, #tpu.memory_space<vmem>>, %arg7: memref<1x128xf32, #tpu.memory_space<vmem>>, %arg8: memref<8x128xf32, #tpu.memory_space<vmem>>) attributes {dimension_semantics = [#tpu.dimension_semantics<parallel>], iteration_bounds = array<i64: 1>, scalar_prefetch = 0 : i64, scratch_operands = 0 : i64, tpu.core_type = #tpu.core_type<tc>, window_params = [{transform_indices = @transform_0, window_bounds = array<i64: 8, 8>}, {pipeline_mode = #tpu.pipeline_mode<synchronous>, transform_indices = @transform_1, window_bounds = array<i64: 8, 128>}, {pipeline_mode = #tpu.pipeline_mode<synchronous>, transform_indices = @transform_2, window_bounds = array<i64: 1, 128>}, {pipeline_mode = #tpu.pipeline_mode<synchronous>, transform_indices = @transform_3, window_bounds = array<i64: 128, 128>}, {pipeline_mode = #tpu.pipeline_mode<synchronous>, transform_indices = @transform_4, window_bounds = array<i64: 1, 128>}, {pipeline_mode = #tpu.pipeline_mode<synchronous>, transform_indices = @transform_5, window_bounds = array<i64: 128, 128>}, {pipeline_mode = #tpu.pipeline_mode<synchronous>, transform_indices = @transform_6, window_bounds = array<i64: 1, 128>}, {transform_indices = @transform_7, window_bounds = array<i64: 8, 128>}]} {
    %c0 = arith.constant 0 : index
    %c0_0 = arith.constant 0 : index
    %0 = vector.load %arg1[%c0, %c0_0] : memref<8x8xf32, #tpu.memory_space<vmem>>, vector<8x8xf32>
    %c0_1 = arith.constant 0 : index
    %c0_2 = arith.constant 0 : index
    %1 = vector.load %arg2[%c0_1, %c0_2] : memref<8x128xf32, #tpu.memory_space<vmem>>, vector<8x128xf32>
    %cst = arith.constant dense<0.000000e+00> : vector<8x128xf32>
    %2 = tpu.matmul %0, %1, %cst {dimension_numbers = #tpu.dot_dimension_numbers<[1], [0], [0], [1], [0, 0, 1, 1], [], []>} : vector<8x8xf32>, vector<8x128xf32>, vector<8x128xf32> -> vector<8x128xf32>
    %c0_3 = arith.constant 0 : index
    %c0_4 = arith.constant 0 : index
    %3 = vector.load %arg3[%c0_3, %c0_4] : memref<1x128xf32, #tpu.memory_space<vmem>>, vector<1x128xf32>
    %4 = vector.broadcast %3 : vector<1x128xf32> to vector<8x128xf32>
    %5 = arith.addf %2, %4 : vector<8x128xf32>
    %cst_5 = arith.constant 0.000000e+00 : f32
    %6 = vector.broadcast %cst_5 : f32 to vector<8x128xf32>
    %7 = arith.maximumf %5, %6 : vector<8x128xf32>
    %c0_6 = arith.constant 0 : index
    %c0_7 = arith.constant 0 : index
    %8 = vector.load %arg4[%c0_6, %c0_7] : memref<128x128xf32, #tpu.memory_space<vmem>>, vector<128x128xf32>
    %cst_8 = arith.constant dense<0.000000e+00> : vector<8x128xf32>
    %9 = tpu.matmul %7, %8, %cst_8 {dimension_numbers = #tpu.dot_dimension_numbers<[1], [0], [0], [1], [0, 0, 1, 1], [], []>} : vector<8x128xf32>, vector<128x128xf32>, vector<8x128xf32> -> vector<8x128xf32>
    %c0_9 = arith.constant 0 : index
    %c0_10 = arith.constant 0 : index
    %10 = vector.load %arg5[%c0_9, %c0_10] : memref<1x128xf32, #tpu.memory_space<vmem>>, vector<1x128xf32>
    %11 = vector.broadcast %10 : vector<1x128xf32> to vector<8x128xf32>
    %12 = arith.addf %9, %11 : vector<8x128xf32>
    %cst_11 = arith.constant 0.000000e+00 : f32
    %13 = vector.broadcast %cst_11 : f32 to vector<8x128xf32>
    %14 = arith.maximumf %12, %13 : vector<8x128xf32>
    %c0_12 = arith.constant 0 : index
    %c0_13 = arith.constant 0 : index
    %15 = vector.load %arg6[%c0_12, %c0_13] : memref<128x128xf32, #tpu.memory_space<vmem>>, vector<128x128xf32>
    %cst_14 = arith.constant dense<0.000000e+00> : vector<8x128xf32>
    %16 = tpu.matmul %14, %15, %cst_14 {dimension_numbers = #tpu.dot_dimension_numbers<[1], [0], [0], [1], [0, 0, 1, 1], [], []>} : vector<8x128xf32>, vector<128x128xf32>, vector<8x128xf32> -> vector<8x128xf32>
    %c0_15 = arith.constant 0 : index
    %c0_16 = arith.constant 0 : index
    %17 = vector.load %arg7[%c0_15, %c0_16] : memref<1x128xf32, #tpu.memory_space<vmem>>, vector<1x128xf32>
    %18 = vector.broadcast %17 : vector<1x128xf32> to vector<8x128xf32>
    %19 = arith.addf %16, %18 : vector<8x128xf32>
    %c0_17 = arith.constant 0 : index
    %c0_18 = arith.constant 0 : index
    %20 = vector.load %arg8[%c0_17, %c0_18] : memref<8x128xf32, #tpu.memory_space<vmem>>, vector<8x128xf32>
    tpu.vector_store %arg8[%c0_17, %c0_18], %19 {strides = array<i32>} : memref<8x128xf32, #tpu.memory_space<vmem>>, vector<8x128xf32>,
    return
  }
  func.func @transform_0(%arg0: i32) -> (i32, i32) {
    %c0_i32 = arith.constant 0 : i32
    %c0_i32_0 = arith.constant 0 : i32
    return %arg0, %c0_i32 : i32, i32
  }
  func.func @transform_1(%arg0: i32) -> (i32, i32) {
    %c0_i32 = arith.constant 0 : i32
    %c0_i32_0 = arith.constant 0 : i32
    %c0_i32_1 = arith.constant 0 : i32
    return %c0_i32, %c0_i32_0 : i32, i32
  }
  func.func @transform_2(%arg0: i32) -> (i32, i32) {
    %c0_i32 = arith.constant 0 : i32
    %c0_i32_0 = arith.constant 0 : i32
    %c0_i32_1 = arith.constant 0 : i32
    return %c0_i32, %c0_i32_0 : i32, i32
  }
  func.func @transform_3(%arg0: i32) -> (i32, i32) {
    %c0_i32 = arith.constant 0 : i32
    %c0_i32_0 = arith.constant 0 : i32
    %c0_i32_1 = arith.constant 0 : i32
    return %c0_i32, %c0_i32_0 : i32, i32
  }
  func.func @transform_4(%arg0: i32) -> (i32, i32) {
    %c0_i32 = arith.constant 0 : i32
    %c0_i32_0 = arith.constant 0 : i32
    %c0_i32_1 = arith.constant 0 : i32
    return %c0_i32, %c0_i32_0 : i32, i32
  }
  func.func @transform_5(%arg0: i32) -> (i32, i32) {
    %c0_i32 = arith.constant 0 : i32
    %c0_i32_0 = arith.constant 0 : i32
    %c0_i32_1 = arith.constant 0 : i32
    return %c0_i32, %c0_i32_0 : i32, i32
  }
  func.func @transform_6(%arg0: i32) -> (i32, i32) {
    %c0_i32 = arith.constant 0 : i32
    %c0_i32_0 = arith.constant 0 : i32
    %c0_i32_1 = arith.constant 0 : i32
    return %c0_i32, %c0_i32_0 : i32, i32
  }
  func.func @transform_7(%arg0: i32) -> (i32, i32) {
    %c0_i32 = arith.constant 0 : i32
    %c0_i32_0 = arith.constant 0 : i32
    return %arg0, %c0_i32 : i32, i32
  }
}

</mosaic_0001>

<bundles_post_ra>
// kernel: qnetwork_forward.1
= control target key start
LH: loop header
LB: loop body
LE: loop exit
PB: predicated region body
PF: predicated region fallthrough
CT: control target
= control target key end

     0   :  { %12 = vsyncpa [#allocation3], 0  ;;  %s750_s0 = inlined_call_operand.hbm [shape: f32[8,8], index: 0, kind: input, shape index: {}]   ;;  %s751_s1 = inlined_call_operand.hbm [shape: f32[8,128], index: 1, kind: input, shape index: {}]   ;;  %s752_s2 = inlined_call_operand.vmem [shape: f32[1,128], index: 2, kind: input, shape index: {}]   ;;  %s753_s3 = inlined_call_operand.hbm [shape: f32[128,128], index: 3, kind: input, shape index: {}]   ;;  %s754_s4 = inlined_call_operand.vmem [shape: f32[1,128], index: 4, kind: input, shape index: {}]   ;;  %s755_s5 = inlined_call_operand.hbm [shape: f32[128,128], index: 5, kind: input, shape index: {}]   ;;  %s756_s6 = inlined_call_operand.vmem [shape: f32[1,128], index: 6, kind: input, shape index: {}]   ;;  %s757_s7 = inlined_call_operand.vmem [shape: f32[8,128], index: 7, kind: output, shape index: {}]  }
   0x1   :  { %13 = vsyncpa [#allocation5], 0 }
   0x2   :  { %14 = vsyncpa [#allocation8], 0  ;;  %s622_s24 = smov [#allocation4]   ;;  %s623_s26 = smov [#allocation2]  }
   0x3   :  { %s31_s25 = sshll.u32 %s622_s24, 4  ;;  %s21_s27 = sshll.u32 %s623_s26, 4  ;;  %s32_s25 = int_to_ptr.vmem [resolvable:$true] %s31_s25  ;;  %s22_s27 = int_to_ptr.vmem [resolvable:$true] %s21_s27 }
   0x4   :  { %s528_s30 = scalar_lea.hbm %s751_s1, 128 }
   0x5   :  { %p529_p0 = scmp.ne.s32.totalorder %s751_s1, %s528_s30  ;;  %p532_p1 = scmp.lt.u32.totalorder %s528_s30, %s751_s1 }
   0x7   :  { %p534_p2 = pnand %p532_p1, %p529_p0 }
   0x9   :  { %537 = shalt.err (!%p534_p2)
}
   0xa   :  { %s538_s12 = scalar_lea.vmem %s32_s25, 128  ;;  %p543_p4 = scmp.lt.s32.totalorder %s32_s25, %s32_s25 }
   0xb   :  { %p539_p3 = scmp.ne.s32.totalorder %s32_s25, %s538_s12  ;;  %p544_p5 = scmp.lt.s32.totalorder %s538_s12, %s538_s12 }
   0xd   :  { %p545_p6 = por %p544_p5, %p543_p4 }
   0xf   :  { %p546_p7 = pnand %p545_p6, %p539_p3 }
  0x11   :  { %549 = shalt.err (!%p546_p7)
}
  0x12   :  { %34 = dma.hbm_to_vmem [thread:$0]  %s751_s1, 128, %s32_s25, [#allocation5]  }
  0x13   :  { %s550_s17 = scalar_lea.hbm %s750_s0, 128 }
  0x14   :  { %p551_p8 = scmp.ne.s32.totalorder %s750_s0, %s550_s17  ;;  %p554_p9 = scmp.lt.u32.totalorder %s550_s17, %s750_s0 }
  0x16   :  { %p556_p10 = pnand %p554_p9, %p551_p8 }
  0x18   :  { %559 = shalt.err (!%p556_p10)
}
  0x19   :  { %s560_s22 = scalar_lea.vmem %s22_s27, 128  ;;  %p565_p12 = scmp.lt.s32.totalorder %s22_s27, %s22_s27 }
  0x1a   :  { %p561_p11 = scmp.ne.s32.totalorder %s22_s27, %s560_s22  ;;  %p566_p13 = scmp.lt.s32.totalorder %s560_s22, %s560_s22 }
  0x1c   :  { %p567_p0 = por %p566_p13, %p565_p12 }
  0x1e   :  { %p568_p1 = pnand %p567_p0, %p561_p11 }
  0x20   :  { %571 = shalt.err (!%p568_p1)
}
  0x21   :  { %24 = dma.hbm_to_vmem [thread:$0]  %s750_s0, 128, %s22_s27, [#allocation3]  }
  0x22   :  { %s624_s24 = smov [#allocation6]   ;;  %s572_s29 = scalar_lea.hbm %s753_s3, 2048 }
  0x23   :  { %s42_s25 = sshll.u32 %s624_s24, 4  ;;  %p573_p2 = scmp.ne.s32.totalorder %s753_s3, %s572_s29  ;;  %s43_s25 = int_to_ptr.vmem [resolvable:$true] %s42_s25 }
  0x24   :  { %p576_p3 = scmp.lt.u32.totalorder %s572_s29, %s753_s3 }
  0x26   :  { %p578_p4 = pnand %p576_p3, %p573_p2 }
  0x28   :  { %581 = shalt.err (!%p578_p4)
}
  0x29   :  { %s582_s11 = scalar_lea.vmem %s43_s25, 2048  ;;  %p587_p6 = scmp.lt.s32.totalorder %s43_s25, %s43_s25 }
  0x2a   :  { %p583_p5 = scmp.ne.s32.totalorder %s43_s25, %s582_s11  ;;  %p588_p7 = scmp.lt.s32.totalorder %s582_s11, %s582_s11 }
  0x2c   :  { %p589_p8 = por %p588_p7, %p587_p6 }
  0x2e   :  { %p590_p9 = pnand %p589_p8, %p583_p5 }
  0x30   :  { %593 = shalt.err (!%p590_p9)
}
  0x31   :  { %s625_s0 = smov 128   ;;  %s626_s27 = smov 8  }
  0x32   :  { %48 = dma.hbm_to_vmem [thread:$0]  %s753_s3, 2048, %s43_s25, [#allocation5], %s625_s0, %s625_s0, %s626_s27  }
  0x33   :  { %s627_s14 = smov [#allocation7]   ;;  %s594_s18 = scalar_lea.hbm %s755_s5, 2048 }
  0x34   :  { %s56_s15 = sshll.u32 %s627_s14, 4  ;;  %p595_p10 = scmp.ne.s32.totalorder %s755_s5, %s594_s18  ;;  %s57_s15 = int_to_ptr.vmem [resolvable:$true] %s56_s15 }
  0x35   :  { %p598_p11 = scmp.lt.u32.totalorder %s594_s18, %s755_s5 }
  0x37   :  { %p600_p12 = pnand %p598_p11, %p595_p10 }
  0x39   :  { %603 = shalt.err (!%p600_p12)
}
  0x3a   :  { %s604_s1 = scalar_lea.vmem %s57_s15, 2048  ;;  %p609_p0 = scmp.lt.s32.totalorder %s57_s15, %s57_s15 }
  0x3b   :  { %p605_p13 = scmp.ne.s32.totalorder %s57_s15, %s604_s1  ;;  %p610_p1 = scmp.lt.s32.totalorder %s604_s1, %s604_s1 }
  0x3d   :  { %p611_p2 = por %p610_p1, %p609_p0 }
  0x3f   :  { %p612_p3 = pnand %p611_p2, %p605_p13 }
  0x41   :  { %615 = shalt.err (!%p612_p3)
}
  0x42   :  { %62 = dma.hbm_to_vmem [thread:$0]  %s755_s5, 2048, %s57_s15, [#allocation8], %s625_s0, %s625_s0, %s626_s27  }
  0x43   :  { %616 = dma.done.wait [#allocation3], 128  }
  0x44   :  { %617 = vsyncadd [#allocation3], 4294967168 }
  0x45   :  { %618 = dma.done.wait [#allocation5], 2176  }
  0x46   :  { %619 = vsyncadd [#allocation5], 4294965120 }
  0x47   :  { %620 = dma.done.wait [#allocation8], 2048  }
  0x48   :  { %621 = vsyncadd [#allocation8], 4294965248  ;;  %v628_v0 = vmov 0.0   ;;  %vm629_vm0 = vmmov 0   ;;  %v630_v1 = vmov 0.0|0.0   ;;  %vm86_vm1 = vcmask 64512  }
  0x49   :  { %396 = vmatprep.subr.mxu0 %v628_v0  ;;  %398 = vmatprep.mubr.msk.f32.mxu0 %vm629_vm0, %v628_v0  ;;  %v78_v2 = vld [vmem:[#allocation4] sm:$0xff]  ;;  %v77_v3 = vld [vmem:[#allocation2] sm:$0xff]  ;;  %v161_v4 = vld [vmem:[#allocation6] sm:$0xff] }
  0x4a   :  { %471 = vmatprep.subr.bf16.mxu1 %v630_v1  ;;  %433 = vmatprep.mubr.msk.f32.mxu1 %vm629_vm0, %v628_v0  ;;  %v162_v5 = vld [vmem:[#allocation6 + $0x8] sm:$0xff]  ;;  %v163_v6 = vld [vmem:[#allocation6 + $0x10] sm:$0xff]  ;;  %v164_v7 = vld [vmem:[#allocation6 + $0x18] sm:$0xff] }
  0x4b   :  { %397 = vmatpush3.msra.mxu0 %v78_v2  ;;  %v472_v8 = vpack.c.bf16 %v162_v5, %v161_v4  ;;  %v475_v9 = vpack.c.bf16 %v164_v7, %v163_v6  ;;  %v165_v10 = vld [vmem:[#allocation6 + $0x20] sm:$0xff]  ;;  %v166_v11 = vld [vmem:[#allocation6 + $0x28] sm:$0xff]  ;;  %v167_v13 = vld [vmem:[#allocation6 + $0x30] sm:$0xff] }
  0x4c   :  { %399 = vmatmul.mubr.msk.f32.vlgmr.msra.gmra.mrb[0].mxu0 %vm86_vm1, %v77_v3  ;;  %495 = vmatprep.subr.bf16.mxu0 %v630_v1  ;;  %v478_v12 = vpack.c.bf16 %v166_v11, %v165_v10  ;;  %v168_v14 = vld [vmem:[#allocation6 + $0x38] sm:$0xff]  ;;  %v169_v16 = vld [vmem:[#allocation6 + $0x40] sm:$0xff]  ;;  %v170_v17 = vld [vmem:[#allocation6 + $0x48] sm:$0xff] }
  0x4d   :  { %468 = vmatprep.mubr.msk.f32.mxu0 %vm629_vm0, %v628_v0  ;;  %473 = vmatpush3.bf16.msra.mxu1 %v472_v8  ;;  %v481_v15 = vpack.c.bf16 %v168_v14, %v167_v13  ;;  %v484_v18 = vpack.c.bf16 %v170_v17, %v169_v16  ;;  %v171_v19 = vld [vmem:[#allocation6 + $0x50] sm:$0xff]  ;;  %v172_v20 = vld [vmem:[#allocation6 + $0x58] sm:$0xff]  ;;  %v173_v22 = vld [vmem:[#allocation6 + $0x60] sm:$0xff] }
  0x4e   :  { %474 = vmatprep.subr.bf16.mxu1 %v630_v1  ;;  %v487_v21 = vpack.c.bf16 %v172_v20, %v171_v19  ;;  %v174_v23 = vld [vmem:[#allocation6 + $0x68] sm:$0xff]  ;;  %v175_v25 = vld [vmem:[#allocation6 + $0x70] sm:$0xff]  ;;  %v176_v26 = vld [vmem:[#allocation6 + $0x78] sm:$0xff] }
  0x4f   :  { %v490_v24 = vpack.c.bf16 %v174_v23, %v173_v22  ;;  %v493_v27 = vpack.c.bf16 %v176_v26, %v175_v25  ;;  %v255_v28 = vld [vmem:[#allocation7] sm:$0xff]  ;;  %v256_v29 = vld [vmem:[#allocation7 + $0x8] sm:$0xff]  ;;  %v257_v30 = vld [vmem:[#allocation7 + $0x10] sm:$0xff] }
  0x50   :  { %v496_v31 = vpack.c.bf16 %v256_v29, %v255_v28  ;;  %v258_v32 = vld [vmem:[#allocation7 + $0x18] sm:$0xff]  ;;  %v259_v34 = vld [vmem:[#allocation7 + $0x20] sm:$0xff]  ;;  %v260_v35 = vld [vmem:[#allocation7 + $0x28] sm:$0xff] }
  0x51   :  { %476 = vmatpush3.bf16.msra.mxu1 %v475_v9  ;;  %v499_v33 = vpack.c.bf16 %v258_v32, %v257_v30  ;;  %v502_v36 = vpack.c.bf16 %v260_v35, %v259_v34  ;;  %v261_v37 = vld [vmem:[#allocation7 + $0x30] sm:$0xff]  ;;  %v262_v38 = vld [vmem:[#allocation7 + $0x38] sm:$0xff]  ;;  %v263_v40 = vld [vmem:[#allocation7 + $0x40] sm:$0xff] }
  0x52   :  { %477 = vmatprep.subr.bf16.mxu1 %v630_v1  ;;  %497 = vmatpush3.bf16.msra.mxu0 %v496_v31  ;;  %v505_v39 = vpack.c.bf16 %v262_v38, %v261_v37  ;;  %v264_v41 = vld [vmem:[#allocation7 + $0x48] sm:$0xff]  ;;  %v265_v43 = vld [vmem:[#allocation7 + $0x50] sm:$0xff]  ;;  %v266_v44 = vld [vmem:[#allocation7 + $0x58] sm:$0xff] }
  0x53   :  { %498 = vmatprep.subr.bf16.mxu0 %v630_v1  ;;  %v508_v42 = vpack.c.bf16 %v264_v41, %v263_v40  ;;  %v511_v45 = vpack.c.bf16 %v266_v44, %v265_v43  ;;  %v267_v46 = vld [vmem:[#allocation7 + $0x60] sm:$0xff]  ;;  %v268_v47 = vld [vmem:[#allocation7 + $0x68] sm:$0xff]  ;;  %v356_v49 = vld [vmem:[%s752_s2] ss:$0 sm:$0xff] }
  0x54   :  { %v514_v48 = vpack.c.bf16 %v268_v47, %v267_v46  ;;  %v269_v54 = vld [vmem:[#allocation7 + $0x70] sm:$0xff]  ;;  %v270_v55 = vld [vmem:[#allocation7 + $0x78] sm:$0xff] }
  0x55   :  { %479 = vmatpush3.bf16.msra.mxu1 %v478_v12  ;;  %v517_v56 = vpack.c.bf16 %v270_v55, %v269_v54  ;;  %v358_v57 = vld [vmem:[%s754_s4] ss:$0 sm:$0xff] }
  0x56   :  { %480 = vmatprep.subr.bf16.mxu1 %v630_v1  ;;  %500 = vmatpush3.bf16.msra.mxu0 %v499_v33  ;;  %v359_v62 = vld [vmem:[%s756_s6] ss:$0 sm:$0xff] }
  0x57   :  { %501 = vmatprep.subr.bf16.mxu0 %v630_v1 }
  0x59   :  { %482 = vmatpush3.bf16.msra.mxu1 %v481_v15 }
  0x5a   :  { %483 = vmatprep.subr.bf16.mxu1 %v630_v1  ;;  %503 = vmatpush3.bf16.msra.mxu0 %v502_v36 }
  0x5b   :  { %504 = vmatprep.subr.bf16.mxu0 %v630_v1 }
  0x5d   :  { %485 = vmatpush3.bf16.msra.mxu1 %v484_v18 }
  0x5e   :  { %486 = vmatprep.subr.bf16.mxu1 %v630_v1  ;;  %506 = vmatpush3.bf16.msra.mxu0 %v505_v39 }
  0x5f   :  { %507 = vmatprep.subr.bf16.mxu0 %v630_v1 }
  0x61   :  { %488 = vmatpush3.bf16.msra.mxu1 %v487_v21 }
  0x62   :  { %489 = vmatprep.subr.bf16.mxu1 %v630_v1  ;;  %509 = vmatpush3.bf16.msra.mxu0 %v508_v42 }
  0x63   :  { %510 = vmatprep.subr.bf16.mxu0 %v630_v1 }
  0x65   :  { %491 = vmatpush3.bf16.msra.mxu1 %v490_v24 }
  0x66   :  { %492 = vmatprep.subr.bf16.mxu1 %v630_v1  ;;  %512 = vmatpush3.bf16.msra.mxu0 %v511_v45 }
  0x67   :  { %513 = vmatprep.subr.bf16.mxu0 %v630_v1 }
  0x69   :  { %494 = vmatpush3.bf16.msra.mxu1 %v493_v27 }
  0x6a   :  { %515 = vmatpush3.bf16.msra.mxu0 %v514_v48 }
  0x6b   :  { %516 = vmatprep.subr.bf16.mxu0 %v630_v1 }
  0x6e   :  { %518 = vmatpush3.bf16.msra.mxu0 %v517_v56 }
 0x11f   :  { %v156_v50 = vpop.f32.mrb[0].mxu0 }
 0x120   :  { %v157_v51 = vadd.f32 %v356_v49, %v156_v50  ;;  %v400_v52 = vpop.f32.mrb[1].mxu0 }
 0x122   :  { %v160_v53 = vmax.f32 %v157_v51, 0.0 }
 0x124   :  { %434 = vmatmul.mubr.f32.vlgmr.msra.gmra.mrb[0].mxu1 %v160_v53 }
 0x1f7   :  { %v250_v58 = vpop.f32.mrb[0].mxu1 }
 0x1f8   :  { %v251_v59 = vadd.f32 %v358_v57, %v250_v58  ;;  %v435_v60 = vpop.f32.mrb[1].mxu1 }
 0x1fa   :  { %v254_v61 = vmax.f32 %v251_v59, 0.0 }
 0x1fc   :  { %469 = vmatmul.mubr.f32.vlgmr.msra.gmra.mrb[2].mxu0 %v254_v61 }
 0x2cf   :  { %v344_v63 = vpop.f32.mrb[2].mxu0 }
 0x2d0   :  { %v345_v0 = vadd.f32 %v359_v62, %v344_v63  ;;  %v470_v1 = vpop.f32.mrb[3].mxu0 }
 0x2d2   :  { %348 = vst [vmem:[%s757_s7] sm:$0xff] %v345_v0 }
 0x2d3   :  { %353 = vsyncpa [#allocation3], 1 }
 0x2d4   :  { %354 = vsyncpa [#allocation5], 1 }
 0x2d5   :  { %355 = vsyncpa [#allocation8], 1 }

</bundles_post_ra>
